<compile_context>
chip_gen: v6e
topology: v6e:2x2x1
jax: 0.10.0
libtpu: 0.0.40
codegen_flags: <defaults>
</compile_context>

<pallas_src>
import functools

import jax
import jax.numpy as jnp
from jax import lax
from jax.experimental import pallas as pl
from jax.experimental.pallas import tpu as pltpu


def _decoder_lstm_kernel(x_ref, h0_ref, c0_ref,
                         w_ih_ref, w_hh_ref, b_gates_ref,
                         w_fc_ref, b_fc_ref,
                         out_ref, gx_ref,
                         *, hidden_dim, output_dim, seq_len, batch, pad_lanes):
    H = hidden_dim
    D = output_dim
    B = batch
    S = seq_len
    w_dtype = w_hh_ref.dtype                       # f32 or bf16 (MXU operands)
    full_tile_act = (4 * H) <= 128                 # one vreg group of lanes

    # ---- Hoisted input projection: ONE MXU matmul over all timesteps,
    #      fused bias added once (outside the serial recurrence).
    gx_ref[...] = (jnp.dot(x_ref[...].astype(w_dtype), w_ih_ref[...],
                           preferred_element_type=jnp.float32)
                   + b_gates_ref[...])             # (S*B, 4H) f32

    def step(t, carry):
        h, c = carry                               # f32 (B, H)
        # Only the recurrent K=H matmul sits on the serial critical path.
        gates = (gx_ref[pl.ds(t * B, B), :]
                 + jnp.dot(h.astype(w_dtype), w_hh_ref[...],
                           preferred_element_type=jnp.float32))   # (B, 4H) f32

        if full_tile_act:
            # 4H fits in one 128-lane group: two full-vreg EUP passes, then slice.
            sig = jax.nn.sigmoid(gates)
            tnh = jnp.tanh(gates)
            i_g = sig[:, 0 * H:1 * H]
            f_g = sig[:, 1 * H:2 * H]
            g_g = tnh[:, 2 * H:3 * H]
            o_g = sig[:, 3 * H:4 * H]
        else:
            # Large H: slice first, activate only what each gate needs.
            i_g = jax.nn.sigmoid(gates[:, 0 * H:1 * H])
            f_g = jax.nn.sigmoid(gates[:, 1 * H:2 * H])
            g_g = jnp.tanh(gates[:, 2 * H:3 * H])
            o_g = jax.nn.sigmoid(gates[:, 3 * H:4 * H])

        c_new = f_g * c + i_g * g_g                # f32 elementwise (v5e-safe)
        h_new = o_g * jnp.tanh(c_new)
        return (h_new, c_new)

    h, c = lax.fori_loop(0, S, step,
                         (h0_ref[...], c0_ref[...]),
                         unroll=True if S <= 8 else 4)

    # fc_out head on the last-step hidden state (== PyTorch prediction for S=1).
    pred = (jnp.dot(h.astype(w_dtype), w_fc_ref[...],
                    preferred_element_type=jnp.float32)
            + b_fc_ref[...])                       # (B, D) f32

    # Pack pred | h | c (+ zero pad) into one lane-dense row; single dense store.
    pieces = [pred, h, c]
    if pad_lanes:
        pieces.append(jnp.zeros((B, pad_lanes), jnp.float32))
    out_ref[...] = jnp.concatenate(pieces, axis=-1)


def prepare_params(params, *, mxu_dtype=jnp.float32):
    """One-time parameter prep: transpose weights, fold biases.

    mxu_dtype=bf16 halves weight-DMA / MXU-operand bytes (worth it on v6e/v7x
    when the call is repeated per decode step); keep f32 on v5e.
    """
    four_h, D = params["w_ih"].shape
    H = four_h // 4
    return {
        "w_ih_t": params["w_ih"].T.astype(mxu_dtype),              # (D, 4H)
        "w_hh_t": params["w_hh"].T.astype(mxu_dtype),              # (H, 4H)
        "b_gates": (params["b_ih"] + params["b_hh"]).reshape(1, 4 * H)
                                                    .astype(jnp.float32),
        "w_fc_t": params["w_fc"].T.astype(mxu_dtype),              # (H, D)
        "b_fc": params["b_fc"].reshape(1, D).astype(jnp.float32),
        "hidden_dim": H,
        "output_dim": D,
    }


def decoder_lstm_forward(x, hidden, cell, prep):
    """Pallas equivalent of DecoderLSTM.forward (num_layers == 1)."""
    S, B, D = x.shape
    H = prep["hidden_dim"]
    assert D == prep["output_dim"]
    assert hidden.shape == (1, B, H) and cell.shape == (1, B, H)

    packed_width = D + 2 * H
    padded_width = ((packed_width + 127) // 128) * 128
    pad_lanes = padded_width - packed_width

    vmem = pl.BlockSpec(memory_space=pltpu.MemorySpace.VMEM)
    kernel = functools.partial(_decoder_lstm_kernel,
                               hidden_dim=H, output_dim=D,
                               seq_len=S, batch=B, pad_lanes=pad_lanes)

    packed = pl.pallas_call(
        kernel,
        out_shape=jax.ShapeDtypeStruct((B, padded_width), jnp.float32),
        in_specs=[vmem] * 8,
        out_specs=vmem,
        scratch_shapes=[pltpu.VMEM((S * B, 4 * H), jnp.float32)],
    )(x.reshape(S * B, D), hidden[0], cell[0],
      prep["w_ih_t"], prep["w_hh_t"], prep["b_gates"],
      prep["w_fc_t"], prep["b_fc"])

    pred = packed[:, :D]
    h_out = packed[:, D:D + H][None]
    c_out = packed[:, D + H:D + 2 * H][None]
    return pred, h_out, c_out


def _reference_forward(x, hidden, cell, params):
    """Pure-JAX reference matching PyTorch nn.LSTM + Linear semantics
    (prediction from the final step's hidden state)."""
    S, B, D = x.shape
    H = params["w_hh"].shape[1]
    h, c = hidden[0], cell[0]
    for t in range(S):
        gates = (x[t] @ params["w_ih"].T + params["b_ih"]
                 + h @ params["w_hh"].T + params["b_hh"])
        i_g = jax.nn.sigmoid(gates[:, 0 * H:1 * H])
        f_g = jax.nn.sigmoid(gates[:, 1 * H:2 * H])
        g_g = jnp.tanh(gates[:, 2 * H:3 * H])
        o_g = jax.nn.sigmoid(gates[:, 3 * H:4 * H])
        c = f_g * c + i_g * g_g
        h = o_g * jnp.tanh(c)
    pred = h @ params["w_fc"].T + params["b_fc"]
    return pred, h[None], c[None]


def _init_params(key, output_dim, hidden_dim):
    ks = jax.random.split(key, 6)
    bound = 1.0 / jnp.sqrt(hidden_dim)
    u = lambda k, shape: jax.random.uniform(k, shape, jnp.float32, -bound, bound)
    return {
        "w_ih": u(ks[0], (4 * hidden_dim, output_dim)),
        "w_hh": u(ks[1], (4 * hidden_dim, hidden_dim)),
        "b_ih": u(ks[2], (4 * hidden_dim,)),
        "b_hh": u(ks[3], (4 * hidden_dim,)),
        "w_fc": u(ks[4], (output_dim, hidden_dim)),
        "b_fc": u(ks[5], (output_dim,)),
    }


if __name__ == "__main__":
    output_dim, hidden_dim = 32, 32
    batch = 8

    key = jax.random.PRNGKey(0)
    k_p, k_x, k_h, k_c, k_x2 = jax.random.split(key, 5)

    params = _init_params(k_p, output_dim, hidden_dim)
    hidden = jax.random.normal(k_h, (1, batch, hidden_dim), jnp.float32)
    cell = jax.random.normal(k_c, (1, batch, hidden_dim), jnp.float32)

    prep_f32 = prepare_params(params, mxu_dtype=jnp.float32)

    # --- Decoder step (seq_len == 1): exact PyTorch module semantics, f32. ---
    x1 = jax.random.normal(k_x, (1, batch, output_dim), jnp.float32)
    p_ref, h_ref, c_ref = _reference_forward(x1, hidden, cell, params)
    pred, h_out, c_out = decoder_lstm_forward(x1, hidden, cell, prep_f32)
    jax.block_until_ready((pred, h_out, c_out))
    assert jnp.allclose(pred, p_ref, atol=1e-5), "prediction mismatch (f32, S=1)"
    assert jnp.allclose(h_out, h_ref, atol=1e-5), "hidden mismatch (f32, S=1)"
    assert jnp.allclose(c_out, c_ref, atol=1e-5), "cell mismatch (f32, S=1)"

    # --- Longer sequence: exercises the hoisted x-projection path.  The
    #     prediction is fc on the LAST step's hidden (PyTorch prediction[-1]).
    S = 8
    x8 = jax.random.normal(k_x2, (S, batch, output_dim), jnp.float32)
    p_ref8, h_ref8, c_ref8 = _reference_forward(x8, hidden, cell, params)
    pred8, h8, c8 = decoder_lstm_forward(x8, hidden, cell, prep_f32)
    jax.block_until_ready((pred8, h8, c8))
    assert jnp.allclose(pred8, p_ref8, atol=1e-4), "prediction mismatch (f32, S=8)"
    assert jnp.allclose(h8, h_ref8, atol=1e-4), "hidden mismatch (f32, S=8)"
    assert jnp.allclose(c8, c_ref8, atol=1e-4), "cell mismatch (f32, S=8)"

    # --- bf16 MXU weight operands (v6e/v7x; skip on v5e), f32 elementwise. ---
    prep_bf16 = prepare_params(params, mxu_dtype=jnp.bfloat16)
    pred_b, h_b, c_b = decoder_lstm_forward(x1, hidden, cell, prep_bf16)
    jax.block_until_ready((pred_b, h_b, c_b))
    assert jnp.allclose(pred_b, p_ref, rtol=5e-2, atol=5e-2), "pred mismatch (bf16)"
    assert jnp.allclose(h_b, h_ref, rtol=5e-2, atol=5e-2), "hidden mismatch (bf16)"
    assert jnp.allclose(c_b, c_ref, rtol=5e-2, atol=5e-2), "cell mismatch (bf16)"

    print("KERNEL_OK")
</pallas_src>

<mosaic_0001>
module attributes {stable_mosaic.version = 11 : i64} {
  func.func @_decoder_lstm_kernel(%arg0: memref<8x32xf32, #tpu.memory_space<vmem>>, %arg1: memref<8x32xf32, #tpu.memory_space<vmem>>, %arg2: memref<8x32xf32, #tpu.memory_space<vmem>>, %arg3: memref<32x128xf32, #tpu.memory_space<vmem>>, %arg4: memref<32x128xf32, #tpu.memory_space<vmem>>, %arg5: memref<1x128xf32, #tpu.memory_space<vmem>>, %arg6: memref<32x32xf32, #tpu.memory_space<vmem>>, %arg7: memref<1x32xf32, #tpu.memory_space<vmem>>, %arg8: memref<8x128xf32, #tpu.memory_space<vmem>>, %arg9: memref<8x128xf32, #tpu.memory_space<vmem>>) attributes {dimension_semantics = [], scalar_prefetch = 0 : i64, scratch_operands = 1 : i64, tpu.core_type = #tpu.core_type<tc>} {
    %c0 = arith.constant 0 : index
    %c0_0 = arith.constant 0 : index
    %0 = vector.load %arg0[%c0, %c0_0] : memref<8x32xf32, #tpu.memory_space<vmem>>, vector<8x32xf32>
    %c0_1 = arith.constant 0 : index
    %c0_2 = arith.constant 0 : index
    %1 = vector.load %arg3[%c0_1, %c0_2] : memref<32x128xf32, #tpu.memory_space<vmem>>, vector<32x128xf32>
    %cst = arith.constant dense<0.000000e+00> : vector<8x128xf32>
    %2 = tpu.matmul %0, %1, %cst {dimension_numbers = #tpu.dot_dimension_numbers<[1], [0], [0], [1], [0, 0, 1, 1], [], []>} : vector<8x32xf32>, vector<32x128xf32>, vector<8x128xf32> -> vector<8x128xf32>
    %c0_3 = arith.constant 0 : index
    %c0_4 = arith.constant 0 : index
    %3 = vector.load %arg5[%c0_3, %c0_4] : memref<1x128xf32, #tpu.memory_space<vmem>>, vector<1x128xf32>
    %4 = vector.broadcast %3 : vector<1x128xf32> to vector<8x128xf32>
    %5 = arith.addf %2, %4 : vector<8x128xf32>
    %c0_5 = arith.constant 0 : index
    %c0_6 = arith.constant 0 : index
    %6 = vector.load %arg9[%c0_5, %c0_6] : memref<8x128xf32, #tpu.memory_space<vmem>>, vector<8x128xf32>
    tpu.vector_store %arg9[%c0_5, %c0_6], %5 {strides = array<i32>} : memref<8x128xf32, #tpu.memory_space<vmem>>, vector<8x128xf32>,
    %c0_7 = arith.constant 0 : index
    %c0_8 = arith.constant 0 : index
    %7 = vector.load %arg1[%c0_7, %c0_8] : memref<8x32xf32, #tpu.memory_space<vmem>>, vector<8x32xf32>
    %c0_9 = arith.constant 0 : index
    %c0_10 = arith.constant 0 : index
    %8 = vector.load %arg2[%c0_9, %c0_10] : memref<8x32xf32, #tpu.memory_space<vmem>>, vector<8x32xf32>
    %c0_i32 = arith.constant 0 : i32
    %c8_i32 = arith.constant 8 : i32
    %9 = arith.muli %c0_i32, %c8_i32 : i32
    %10 = arith.index_cast %9 : i32 to index
    %c0_11 = arith.constant 0 : index
    %11 = vector.load %arg9[%10, %c0_11] : memref<8x128xf32, #tpu.memory_space<vmem>>, vector<8x128xf32>
    %c0_12 = arith.constant 0 : index
    %c0_13 = arith.constant 0 : index
    %12 = vector.load %arg4[%c0_12, %c0_13] : memref<32x128xf32, #tpu.memory_space<vmem>>, vector<32x128xf32>
    %cst_14 = arith.constant dense<0.000000e+00> : vector<8x128xf32>
    %13 = tpu.matmul %7, %12, %cst_14 {dimension_numbers = #tpu.dot_dimension_numbers<[1], [0], [0], [1], [0, 0, 1, 1], [], []>} : vector<8x32xf32>, vector<32x128xf32>, vector<8x128xf32> -> vector<8x128xf32>
    %14 = arith.addf %11, %13 : vector<8x128xf32>
    %15 = arith.negf %14 : vector<8x128xf32>
    %16 = math.exp %15 : vector<8x128xf32>
    %cst_15 = arith.constant 1.000000e+00 : f32
    %17 = vector.broadcast %cst_15 : f32 to vector<8x128xf32>
    %18 = arith.addf %17, %16 : vector<8x128xf32>
    %19 = arith.divf %17, %18 : vector<8x128xf32>
    %20 = math.tanh %14 : vector<8x128xf32>
    %21 = vector.extract_strided_slice %19 {offsets = [0, 0], sizes = [8, 32], strides = [1, 1]} : vector<8x128xf32> to vector<8x32xf32>
    %22 = vector.extract_strided_slice %19 {offsets = [0, 32], sizes = [8, 32], strides = [1, 1]} : vector<8x128xf32> to vector<8x32xf32>
    %23 = vector.extract_strided_slice %20 {offsets = [0, 64], sizes = [8, 32], strides = [1, 1]} : vector<8x128xf32> to vector<8x32xf32>
    %24 = vector.extract_strided_slice %19 {offsets = [0, 96], sizes = [8, 32], strides = [1, 1]} : vector<8x128xf32> to vector<8x32xf32>
    %25 = arith.mulf %22, %8 : vector<8x32xf32>
    %26 = arith.mulf %21, %23 : vector<8x32xf32>
    %27 = arith.addf %25, %26 : vector<8x32xf32>
    %28 = math.tanh %27 : vector<8x32xf32>
    %29 = arith.mulf %24, %28 : vector<8x32xf32>
    %c1_i32 = arith.constant 1 : i32
    %c0_16 = arith.constant 0 : index
    %c0_17 = arith.constant 0 : index
    %30 = vector.load %arg6[%c0_16, %c0_17] : memref<32x32xf32, #tpu.memory_space<vmem>>, vector<32x32xf32>
    %cst_18 = arith.constant dense<0.000000e+00> : vector<8x32xf32>
    %31 = tpu.matmul %29, %30, %cst_18 {dimension_numbers = #tpu.dot_dimension_numbers<[1], [0], [0], [1], [0, 0, 1, 1], [], []>} : vector<8x32xf32>, vector<32x32xf32>, vector<8x32xf32> -> vector<8x32xf32>
    %c0_19 = arith.constant 0 : index
    %c0_20 = arith.constant 0 : index
    %32 = vector.load %arg7[%c0_19, %c0_20] : memref<1x32xf32, #tpu.memory_space<vmem>>, vector<1x32xf32>
    %33 = vector.broadcast %32 : vector<1x32xf32> to vector<8x32xf32>
    %34 = arith.addf %31, %33 : vector<8x32xf32>
    %cst_21 = arith.constant 0.000000e+00 : f32
    %35 = vector.broadcast %cst_21 : f32 to vector<8x32xf32>
    %36 = tpu.concatenate %34, %29, %27, %35 in 1 : vector<8x32xf32>, vector<8x32xf32>, vector<8x32xf32>, vector<8x32xf32> -> vector<8x128xf32>
    %c0_22 = arith.constant 0 : index
    %c0_23 = arith.constant 0 : index
    %37 = vector.load %arg8[%c0_22, %c0_23] : memref<8x128xf32, #tpu.memory_space<vmem>>, vector<8x128xf32>
    tpu.vector_store %arg8[%c0_22, %c0_23], %36 {strides = array<i32>} : memref<8x128xf32, #tpu.memory_space<vmem>>, vector<8x128xf32>,
    return
  }
}

</mosaic_0001>

<bundles_post_ra>
// kernel: tpu_custom_call.1
= control target key start
LH: loop header
LB: loop body
LE: loop exit
PB: predicated region body
PF: predicated region fallthrough
CT: control target
= control target key end

     0   :  { %13 = vsyncpa [#allocation4], 0  ;;  %s767_s0 = inlined_call_operand.hbm [shape: f32[8,32], index: 0, kind: input, shape index: {}]   ;;  %s768_s1 = inlined_call_operand.hbm [shape: f32[8,32], index: 1, kind: input, shape index: {}]   ;;  %s769_s2 = inlined_call_operand.hbm [shape: f32[8,32], index: 2, kind: input, shape index: {}]   ;;  %s770_s3 = inlined_call_operand.hbm [shape: f32[32,128], index: 3, kind: input, shape index: {}]   ;;  %s771_s4 = inlined_call_operand.hbm [shape: f32[32,128], index: 4, kind: input, shape index: {}]   ;;  %s772_s5 = inlined_call_operand.vmem [shape: f32[1,128], index: 5, kind: input, shape index: {}]   ;;  %s773_s6 = inlined_call_operand.hbm [shape: f32[32,32], index: 6, kind: input, shape index: {}]   ;;  %s774_s7 = inlined_call_operand.vmem [shape: f32[1,32], index: 7, kind: input, shape index: {}]   ;;  %s775_s8 = inlined_call_operand.hbm [shape: f32[8,128], index: 8, kind: output, shape index: {}]  }
   0x1   :  { %14 = vsyncpa [#allocation7], 0 }
   0x2   :  { %15 = vsyncpa [#allocation10], 0 }
   0x3   :  { %16 = vsyncpa [#allocation13], 0 }
   0x4   :  { %17 = vsyncpa [#allocation5], 0  ;;  %s644_s27 = smov [#allocation6]   ;;  %s645_s29 = smov [#allocation9]  }
   0x5   :  { %s34_s28 = sshll.u32 %s644_s27, 4  ;;  %s53_s30 = sshll.u32 %s645_s29, 4  ;;  %s35_s28 = int_to_ptr.vmem [resolvable:$true] %s34_s28  ;;  %s54_s30 = int_to_ptr.vmem [resolvable:$true] %s53_s30 }
   0x6   :  { %s502_s9 = scalar_lea.vmem %s35_s28, 128  ;;  %p507_p1 = scmp.lt.s32.totalorder %s35_s28, %s35_s28 }
   0x7   :  { %p503_p0 = scmp.ne.s32.totalorder %s35_s28, %s502_s9  ;;  %p508_p2 = scmp.lt.s32.totalorder %s502_s9, %s502_s9 }
   0x9   :  { %p509_p3 = por %p508_p2, %p507_p1 }
   0xb   :  { %p510_p4 = pnand %p509_p3, %p503_p0 }
   0xd   :  { %513 = shalt.err (!%p510_p4)
}
   0xe   :  { %37 = dma.hbm_to_vmem [thread:$0]  %s768_s1, 128, %s35_s28, [#allocation7]  }
   0xf   :  { %s522_s12 = scalar_lea.vmem %s54_s30, 512  ;;  %p527_p6 = scmp.lt.s32.totalorder %s54_s30, %s54_s30 }
  0x10   :  { %p523_p5 = scmp.ne.s32.totalorder %s54_s30, %s522_s12  ;;  %p528_p7 = scmp.lt.s32.totalorder %s522_s12, %s522_s12 }
  0x12   :  { %p529_p8 = por %p528_p7, %p527_p6 }
  0x14   :  { %p530_p9 = pnand %p529_p8, %p523_p5 }
  0x16   :  { %533 = shalt.err (!%p530_p9)
}
  0x17   :  { %s646_s13 = smov 128   ;;  %s647_s14 = smov 8  }
  0x18   :  { %59 = dma.hbm_to_vmem [thread:$0]  %s770_s3, 512, %s54_s30, [#allocation10], %s646_s13, %s646_s13, %s647_s14  }
  0x19   :  { %s648_s17 = smov [#allocation3]   ;;  %s649_s19 = smov [#allocation8]  }
  0x1a   :  { %s24_s18 = sshll.u32 %s648_s17, 4  ;;  %s44_s1 = sshll.u32 %s649_s19, 4  ;;  %s25_s18 = int_to_ptr.vmem [resolvable:$true] %s24_s18  ;;  %s45_s1 = int_to_ptr.vmem [resolvable:$true] %s44_s1 }
  0x1b   :  { %s542_s20 = scalar_lea.vmem %s25_s18, 128  ;;  %p547_p11 = scmp.lt.s32.totalorder %s25_s18, %s25_s18 }
  0x1c   :  { %p543_p10 = scmp.ne.s32.totalorder %s25_s18, %s542_s20  ;;  %p548_p12 = scmp.lt.s32.totalorder %s542_s20, %s542_s20 }
  0x1e   :  { %p549_p13 = por %p548_p12, %p547_p11 }
  0x20   :  { %p550_p0 = pnand %p549_p13, %p543_p10 }
  0x22   :  { %553 = shalt.err (!%p550_p0)
}
  0x23   :  { %27 = dma.hbm_to_vmem [thread:$0]  %s767_s0, 128, %s25_s18, [#allocation4]  }
  0x24   :  { %s562_s23 = scalar_lea.vmem %s45_s1, 128  ;;  %p567_p2 = scmp.lt.s32.totalorder %s45_s1, %s45_s1 }
  0x25   :  { %p563_p1 = scmp.ne.s32.totalorder %s45_s1, %s562_s23  ;;  %p568_p3 = scmp.lt.s32.totalorder %s562_s23, %s562_s23 }
  0x27   :  { %p569_p4 = por %p568_p3, %p567_p2 }
  0x29   :  { %p570_p5 = pnand %p569_p4, %p563_p1 }
  0x2b   :  { %573 = shalt.err (!%p570_p5)
}
  0x2c   :  { %47 = dma.hbm_to_vmem [thread:$0]  %s769_s2, 128, %s45_s1, [#allocation7]  }
  0x2d   :  { %s650_s25 = smov [#allocation11]   ;;  %s651_s27 = smov [#allocation12]  }
  0x2e   :  { %s65_s26 = sshll.u32 %s650_s25, 4  ;;  %s79_s28 = sshll.u32 %s651_s27, 4  ;;  %s66_s26 = int_to_ptr.vmem [resolvable:$true] %s65_s26  ;;  %s80_s28 = int_to_ptr.vmem [resolvable:$true] %s79_s28 }
  0x2f   :  { %s582_s29 = scalar_lea.vmem %s66_s26, 512  ;;  %p587_p7 = scmp.lt.s32.totalorder %s66_s26, %s66_s26 }
  0x30   :  { %p583_p6 = scmp.ne.s32.totalorder %s66_s26, %s582_s29  ;;  %p588_p8 = scmp.lt.s32.totalorder %s582_s29, %s582_s29 }
  0x32   :  { %p589_p9 = por %p588_p8, %p587_p7 }
  0x34   :  { %p590_p10 = pnand %p589_p9, %p583_p6 }
  0x36   :  { %593 = shalt.err (!%p590_p10)
}
  0x37   :  { %71 = dma.hbm_to_vmem [thread:$0]  %s771_s4, 512, %s66_s26, [#allocation10], %s646_s13, %s646_s13, %s647_s14  }
  0x38   :  { %s602_s2 = scalar_lea.vmem %s80_s28, 512  ;;  %p607_p12 = scmp.lt.s32.totalorder %s80_s28, %s80_s28 }
  0x39   :  { %p603_p11 = scmp.ne.s32.totalorder %s80_s28, %s602_s2  ;;  %p608_p13 = scmp.lt.s32.totalorder %s602_s2, %s602_s2 }
  0x3b   :  { %p609_p0 = por %p608_p13, %p607_p12 }
  0x3d   :  { %p610_p1 = pnand %p609_p0, %p603_p11 }
  0x3f   :  { %613 = shalt.err (!%p610_p1)
}
  0x40   :  { %85 = dma.hbm_to_vmem [thread:$0]  %s773_s6, 512, %s80_s28, [#allocation13], %s646_s13, %s646_s13, %s647_s14  }
  0x41   :  { %634 = dma.done.wait [#allocation4], 128  }
  0x42   :  { %635 = vsyncadd [#allocation4], 4294967168 }
  0x43   :  { %636 = dma.done.wait [#allocation7], 256  }
  0x44   :  { %637 = vsyncadd [#allocation7], 4294967040 }
  0x45   :  { %638 = dma.done.wait [#allocation10], 1024  }
  0x46   :  { %639 = vsyncadd [#allocation10], 4294966272 }
  0x47   :  { %640 = dma.done.wait [#allocation13], 512  }
  0x48   :  { %641 = vsyncadd [#allocation13], 4294966784  ;;  %v652_v0 = vmov 0.0   ;;  %vm653_vm0 = vmmov 0   ;;  %v110_v1 = vld [vmem:[#allocation9 + $0x18] sm:$0xff]  ;;  %v109_v3 = vld [vmem:[#allocation9 + $0x10] sm:$0xff] }
  0x49   :  { %440 = vmatprep.subr.mxu0 %v652_v0  ;;  %451 = vmatprep.subr.mxu1 %v652_v0  ;;  %v199_v2 = vld [vmem:[#allocation11 + $0x18] sm:$0xff]  ;;  %v198_v4 = vld [vmem:[#allocation11 + $0x10] sm:$0xff]  ;;  %v108_v5 = vld [vmem:[#allocation9 + $0x8] sm:$0xff]  ;;  %vm118_vm1 = vcmask 261120   ;;  %s654_s11 = smov 64   ;;  %s655_s12 = smov 32  }
  0x4a   :  { %448 = vmatprep.mubr.msk.f32.mxu0 %vm653_vm0, %v652_v0  ;;  %459 = vmatprep.mubr.msk.f32.mxu1 %vm653_vm0, %v652_v0  ;;  %v197_v6 = vld [vmem:[#allocation11 + $0x8] sm:$0xff]  ;;  %v107_v7 = vld [vmem:[#allocation9] sm:$0xff]  ;;  %v193_v10 = vld [vmem:[#allocation6] sm:$0xff]  ;;  %vm396_vm2 = vcmask 523264   ;;  %s656_s14 = smov [#allocation14]   ;;  %vm398_vm3 = vcmask 785408  }
  0x4b   :  { %441 = vmatpush3.msra.mxu0 %v110_v1  ;;  %452 = vmatpush3.msra.mxu1 %v199_v2  ;;  %v196_v8 = vld [vmem:[#allocation11] sm:$0xff]  ;;  %v106_v9 = vld [vmem:[#allocation3] sm:$0xff]  ;;  %v194_v19 = vld [vmem:[#allocation8] sm:$0xff]  ;;  %s407_s15 = sshll.u32 %s656_s14, 4  ;;  %s408_s15 = int_to_ptr.vmem [resolvable:$true] %s407_s15 }
  0x4c   :  { %442 = vmatprep.subr.mxu0 %v652_v0  ;;  %453 = vmatprep.subr.mxu1 %v652_v0  ;;  %v419_v11 = vld [vmem:[%s772_s5] ss:$0 sm:$0xff]  ;;  %v305_v30 = vld [vmem:[#allocation12 + $0x18] sm:$0xff]  ;;  %v304_v31 = vld [vmem:[#allocation12 + $0x10] sm:$0xff]  ;;  %s614_s16 = scalar_lea.vmem %s408_s15, 128  ;;  %p619_p3 = scmp.lt.s32.totalorder %s408_s15, %s408_s15 }
  0x4d   :  { %443 = vmatpush3.msra.mxu0 %v109_v3  ;;  %454 = vmatpush3.msra.mxu1 %v198_v4  ;;  %v303_v32 = vld [vmem:[#allocation12 + $0x8] sm:$0xff]  ;;  %v302_v33 = vld [vmem:[#allocation12] sm:$0xff]  ;;  %p615_p2 = scmp.ne.s32.totalorder %s408_s15, %s614_s16  ;;  %p620_p4 = scmp.lt.s32.totalorder %s614_s16, %s614_s16 }
  0x4e   :  { %444 = vmatprep.subr.mxu0 %v652_v0  ;;  %455 = vmatprep.subr.mxu1 %v652_v0  ;;  %v423_v38 = vld [vmem:[%s774_s7] ss:$0 sm:$0xff] }
  0x4f   :  { %445 = vmatpush3.msra.mxu0 %v108_v5  ;;  %456 = vmatpush3.msra.mxu1 %v197_v6  ;;  %p621_p5 = por %p620_p4, %p619_p3 }
  0x50   :  { %446 = vmatprep.subr.mxu0 %v652_v0  ;;  %457 = vmatprep.subr.mxu1 %v652_v0 }
  0x51   :  { %447 = vmatpush3.msra.mxu0 %v107_v7  ;;  %458 = vmatpush3.msra.mxu1 %v196_v8  ;;  %p622_p6 = pnand %p621_p5, %p615_p2 }
  0x52   :  { %449 = vmatmul.mubr.msk.f32.vlgmr.msra.gmra.mxu0 %vm118_vm1, %v106_v9  ;;  %460 = vmatmul.mubr.msk.f32.vlgmr.msra.gmra.mxu1 %vm118_vm1, %v193_v10 }
  0x53   :  { %462 = vmatprep.subr.mxu0 %v652_v0  ;;  %470 = vmatprep.mubr.msk.f32.mxu0 %vm653_vm0, %v652_v0 }
  0x54   :  { %463 = vmatpush3.msra.mxu0 %v305_v30 }
  0x55   :  { %464 = vmatprep.subr.mxu0 %v652_v0 }
  0x56   :  { %465 = vmatpush3.msra.mxu0 %v304_v31 }
  0x57   :  { %466 = vmatprep.subr.mxu0 %v652_v0 }
  0x58   :  { %467 = vmatpush3.msra.mxu0 %v303_v32 }
  0x59   :  { %468 = vmatprep.subr.mxu0 %v652_v0 }
  0x5a   :  { %469 = vmatpush3.msra.mxu0 %v302_v33 }
 0x112   :  { %v188_v12 = vpop.f32.mrf.mxu0  ;;  %v269_v13 = vpop.f32.mrf.mxu1 }
 0x113   :  { %v189_v14 = vadd.f32 %v419_v11, %v188_v12 }
 0x114   :  { %v450_v15 = vpop.f32.mrf.mxu0  ;;  %v461_v16 = vpop.f32.mrf.mxu1 }
 0x115   :  { %v273_v17 = vadd.f32 %v269_v13, %v189_v14 }
 0x117   :  { %486 = vtanh.f32 %v273_v17  ;;  %v422_v20 = vmul.f32 -1.442695, %v273_v17 }
 0x119   :  { %488 = vpow2.f32 %v422_v20 }
 0x124   :  { %v487_v18 = vpop.eup %486 }
 0x125   :  { %287 = vrot.lane.b32.xlu0 %v487_v18, %s654_s11 }
 0x126   :  { %v489_v21 = vpop.eup %488 }
 0x127   :  { %v277_v22 = vadd.f32 1.0, %v489_v21 }
 0x129   :  { %282 = vrot.lane.b32.xlu0 %v194_v19, %s655_s12  ;;  %490 = vrcp.f32 %v277_v22 }
 0x136   :  { %v491_v23 = vpop.eup %490 }
 0x197   :  { %v288_v24 = vpop.permute.xlu0 %287 }
 0x198   :  { %v290_v25 = vmul.f32 %v491_v23, %v288_v24 }
 0x19a   :  { %292 = vrot.lane.b32.xlu1 %v290_v25, %s655_s12 }
 0x19b   :  { %v283_v26 = vpop.permute.xlu0 %282 }
 0x19c   :  { %v285_v27 = vmul.f32 %v491_v23, %v283_v26 }
 0x20c   :  { %v293_v28 = vpop.permute.xlu1 %292 }
 0x20d   :  { %v295_v29 = vadd.f32 %v293_v28, %v285_v27 }
 0x20f   :  { %492 = vtanh.f32 %v295_v29 }
 0x21c   :  { %v493_v34 = vpop.eup %492 }
 0x21d   :  { %298 = vrot.lane.b32.xlu1 %v493_v34, %s654_s11 }
 0x28f   :  { %v299_v35 = vpop.permute.xlu1 %298 }
 0x290   :  { %v301_v36 = vmul.f32 %v491_v23, %v299_v35 }
 0x292   :  { %388 = vrot.lane.b32.xlu1 %v301_v36, %s654_s11  ;;  %314 = vrot.lane.b32.xlu0 %v301_v36, %s655_s12 }
 0x296   :  { %392 = vrot.lane.b32.xlu0 %v295_v29, %s655_s12 }
 0x304   :  { %v315_v37 = vpop.permute.xlu0 %314  ;;  %v389_v41 = vpop.permute.xlu1 %388 }
 0x305   :  { %471 = vmatmul.mubr.msk.f32.vlgmr.msra.gmra.mxu0 %vm118_vm1, %v315_v37 }
 0x308   :  { %v393_v43 = vpop.permute.xlu0 %392 }
 0x3c5   :  { %v384_v39 = vpop.f32.mrf.mxu0 }
 0x3c6   :  { %v385_v40 = vadd.f32 %v423_v38, %v384_v39 }
 0x3c7   :  { %v472_v42 = vpop.f32.mrf.mxu0 }
 0x3c8   :  { %v395_v44 = vsel %vm118_vm1, %v385_v40, %v389_v41 }
 0x3c9   :  { %v397_v45 = vsel %vm396_vm2, %v395_v44, %v393_v43 }
 0x3ca   :  { %v399_v46 = vsel %vm398_vm3, %v397_v45, 0.0 }
 0x3cb   :  { %400 = vst [vmem:[#allocation14] sm:$0xff] %v399_v46 }
 0x3cc   :  { %625 = shalt.err (!%p622_p6)
}
 0x3cd   :  { %410 = dma.vmem_to_hbm [thread:$0]  %s408_s15, 128, %s775_s8, [#allocation5]  }
 0x3ce   :  { %642 = dma.done.wait [#allocation5], 128  }
 0x3cf   :  { %643 = vsyncadd [#allocation5], 4294967168 }
 0x3d0   :  { %414 = vsyncpa [#allocation4], 1 }
 0x3d1   :  { %415 = vsyncpa [#allocation7], 1 }
 0x3d2   :  { %416 = vsyncpa [#allocation10], 1 }
 0x3d3   :  { %417 = vsyncpa [#allocation13], 1 }
 0x3d4   :  { %418 = vsyncpa [#allocation5], 1 }

</bundles_post_ra>
